<compile_context>
chip_gen: v6e
topology: v6e:2x2x1
jax: 0.10.0
libtpu: 0.0.40
codegen_flags: <defaults>
</compile_context>

<pallas_src>
import functools
import math

import jax
import jax.numpy as jnp
from jax.experimental import pallas as pl
from jax.experimental.pallas import tpu as pltpu

_SQRT2 = math.sqrt(2.0)
_SQRT_2_OVER_PI = math.sqrt(2.0 / math.pi)
_GELU_CUBIC = 0.044715


def _round_up(v, m):
  return ((v + m - 1) // m) * m


def _elementwise_dtype():
  """bf16 elementwise math on chips with a bf16 VPU/EUP (v6e/v7x), f32 else."""
  try:
    kind = jax.devices()[0].device_kind.lower()
  except Exception:
    return jnp.float32
  if any(tag in kind for tag in ("v6", "v7", "tpu7", "7x")):
    return jnp.bfloat16
  return jnp.float32


def _gelu_tanh(x):
  """tanh-form GELU (PyTorch nn.GELU(approximate='tanh') numerics).

  tanh lowers to the EUP slot; only a handful of VALU mul/adds remain, which
  matters because the GELU is the VALU-saturating path once the matmuls run
  in bf16 on the MXU.
  """
  inner = (_SQRT_2_OVER_PI * x) * (1.0 + _GELU_CUBIC * (x * x))
  return 0.5 * x * (1.0 + jnp.tanh(inner))


def edgeconv2_kernel(x_ref, w1_ref, b1_ref, w2_ref, b2_ref, w3_ref, b3_ref,
                     o_ref, *, ew_dtype):
  """One (batch, point-tile) grid step.

  x_ref : (TN, F)   bf16 point features (rows = points of one batch element)
  wX_ref: (Cin, Cw) bf16 1x1-conv weights with the BN scale pre-folded in
  bX_ref: (1, Cw)   f32 folded BatchNorm shift
  o_ref : (C8, TN)  f32 transposed output tile (channels in sublanes,
                    points in lanes -> lane-dense store)
  """

  def act(h):
    # Pre-activation arrives in f32 (MXU accumulator); GELU runs in ew_dtype
    # (bf16 on v6e/v7x, f32 on v5e which lacks a bf16 VPU/EUP).
    return _gelu_tanh(h.astype(ew_dtype))

  h = jnp.dot(x_ref[...], w1_ref[...], preferred_element_type=jnp.float32)
  h = act(h + b1_ref[...]).astype(jnp.bfloat16)          # (TN, Cp)
  h = jnp.dot(h, w2_ref[...], preferred_element_type=jnp.float32)
  h = act(h + b2_ref[...]).astype(jnp.bfloat16)          # (TN, Cp)
  h = jnp.dot(h, w3_ref[...], preferred_element_type=jnp.float32)
  y = act(h + b3_ref[...]).astype(jnp.float32)           # (TN, C8)
  # XLU transpose -> (C8, TN); the points axis lands in lanes so the store is
  # unmasked whenever TN is a multiple of 128 (or the full point dim).
  o_ref[...] = y.T


def edgeconv2_forward(x, params, num_neighbors):
  """x: (B, N, F) float32 -> (B, C, N) float32, matching the PyTorch module."""
  del num_neighbors  # Output is provably independent of k / the knn indices.
  B, N, F = x.shape
  (w1, s1, b1, w2, s2, b2, w3, s3, b3) = params
  C = w1.shape[1]

  Cp = _round_up(C, 128)   # layer-1/2 intermediate width (lane-dense)
  C8 = _round_up(C, 8)     # output channel rows (sublane-aligned)

  def fold_pad(w, scale, shift, cin_pad, cout_pad):
    wf = w.astype(jnp.float32) * scale.astype(jnp.float32)   # fold BN scale
    wf = jnp.pad(wf, ((0, cin_pad - wf.shape[0]), (0, cout_pad - wf.shape[1])))
    bf = jnp.pad(shift.astype(jnp.float32),
                 ((0, 0), (0, cout_pad - shift.shape[1])))
    return wf.astype(jnp.bfloat16), bf      # bf16 weights, f32 shift

  w1f, b1f = fold_pad(w1, s1, b1, F, Cp)
  w2f, b2f = fold_pad(w2, s2, b2, Cp, Cp)
  w3f, b3f = fold_pad(w3, s3, b3, Cp, C8)   # last layer only C8 wide

  # ---- point-axis tiling ---------------------------------------------------
  # Large tiles amortize the ~0.35us/step pipeline overhead; keep >= 2 grid
  # steps whenever the shape allows so both v7x TensorCores get work.
  MAX_TN = 1024
  N128 = _round_up(N, 128)
  if N <= MAX_TN:
    if B == 1 and N128 >= 256:
      TN = min(MAX_TN, _round_up(N128 // 2, 128))  # split -> >=2 steps
    else:
      TN = _round_up(N, 8)                         # one full-dim tile / batch
  else:
    TN = MAX_TN                                    # multiple of 128
  Np = _round_up(N, TN)
  T = Np // TN

  xr = x.astype(jnp.bfloat16)
  if Np != N:
    xr = jnp.pad(xr, ((0, 0), (0, Np - N), (0, 0)))

  kernel = functools.partial(edgeconv2_kernel, ew_dtype=_elementwise_dtype())
  const = lambda b, t: (0, 0)

  grid_spec = pltpu.PrefetchScalarGridSpec(
      num_scalar_prefetch=0,
      grid=(B, T),
      in_specs=[
          pl.BlockSpec((None, TN, F), lambda b, t: (b, t, 0)),
          pl.BlockSpec((F, Cp), const),
          pl.BlockSpec((1, Cp), const),
          pl.BlockSpec((Cp, Cp), const),
          pl.BlockSpec((1, Cp), const),
          pl.BlockSpec((Cp, C8), const),
          pl.BlockSpec((1, C8), const),
      ],
      out_specs=pl.BlockSpec((None, C8, TN), lambda b, t: (b, 0, t)),
  )

  out = pl.pallas_call(
      kernel,
      out_shape=jax.ShapeDtypeStruct((B, C8, Np), jnp.float32),
      grid_spec=grid_spec,
      compiler_params=pltpu.CompilerParams(
          dimension_semantics=("parallel", "parallel")),
  )(xr, w1f, b1f, w2f, b2f, w3f, b3f)

  # Padded channel rows / point columns are sliced off (padded channels are
  # exactly zero through every layer; padded points never reach the caller).
  return out[:, :C, :N]


def make_params(key, in_channels, out_channels):
  """Deterministic synthetic parameters (conv weights + eval-mode BN)."""
  eps = 1e-5
  keys = jax.random.split(key, 9)

  def conv_w(k, cin, cout):
    bound = 1.0 / math.sqrt(cin)       # ~ PyTorch kaiming_uniform(a=sqrt(5))
    return jax.random.uniform(k, (cin, cout), jnp.float32, -bound, bound)

  def bn_fold(kg, kb, c):
    gamma = 1.0 + 0.1 * jax.random.normal(kg, (1, c), jnp.float32)
    beta = 0.1 * jax.random.normal(kb, (1, c), jnp.float32)
    running_mean = jnp.zeros((1, c), jnp.float32)
    running_var = jnp.ones((1, c), jnp.float32)
    scale = gamma / jnp.sqrt(running_var + eps)
    shift = beta - running_mean * scale
    return scale, shift

  w1 = conv_w(keys[0], in_channels, out_channels)
  s1, b1 = bn_fold(keys[1], keys[2], out_channels)
  w2 = conv_w(keys[3], out_channels, out_channels)
  s2, b2 = bn_fold(keys[4], keys[5], out_channels)
  w3 = conv_w(keys[6], out_channels, out_channels)
  s3, b3 = bn_fold(keys[7], keys[8], out_channels)
  return (w1, s1, b1, w2, s2, b2, w3, s3, b3)


def edgeconv2_reference(x, params, num_neighbors):
  """Pure-JAX literal transcription of the PyTorch forward (exact erf GELU),
  including the (index-irrelevant) distance / top-k / gather / mean path."""
  B, N, F = x.shape
  (w1, s1, b1, w2, s2, b2, w3, s3, b3) = params
  k = num_neighbors

  d = jnp.sum((x[:, :, None, :] - x[:, None, :, :]) ** 2, axis=-1)
  _, idx = jax.lax.top_k(-d, k)
  nb = jnp.broadcast_to(x[:, :, None, :], (B, N, N, F))
  nb = jnp.take_along_axis(nb, idx[..., None], axis=2)            # (B,N,k,F)

  def gelu(v):
    return 0.5 * v * (1.0 + jax.lax.erf(v / _SQRT2))

  def block(h, w, s, b):
    y = jnp.einsum('bnkf,fc->bnkc', h, w)
    return gelu(y * s[0] + b[0])

  h = block(nb, w1, s1, b1)
  h = block(h, w2, s2, b2)
  h = block(h, w3, s3, b3)
  out = jnp.mean(h, axis=2)                                       # (B, N, C)
  return jnp.transpose(out, (0, 2, 1))                            # (B, C, N)


if __name__ == "__main__":
  batch = 2
  num_points = 16       # N
  in_channels = 8       # F (num_features of the point cloud)
  out_channels = 32     # C
  num_neighbors = 4     # k

  key = jax.random.PRNGKey(0)
  kx, kp = jax.random.split(key)
  x = jax.random.normal(kx, (batch, num_points, in_channels), jnp.float32)
  params = make_params(kp, in_channels, out_channels)

  fwd = jax.jit(functools.partial(edgeconv2_forward,
                                  num_neighbors=num_neighbors))
  y = jax.block_until_ready(fwd(x, params))

  y_ref = edgeconv2_reference(x, params, num_neighbors)
  assert y.shape == (batch, out_channels, num_points), y.shape
  err = float(jnp.max(jnp.abs(y - y_ref)))
  # Tolerance covers bf16 matmul operands across three layers, bf16 elementwise
  # GELU on v6e/v7x, and the tanh-form GELU approximation vs exact erf GELU
  # (each contributes O(1e-3) max-abs at these shapes).  A layout / weight
  # error would show up as O(1e-1)+.
  assert err < 5e-2, err

  print("KERNEL_OK")
</pallas_src>

<mosaic_0001>
module attributes {stable_mosaic.version = 11 : i64} {
  func.func @edgeconv2_kernel(%arg0: i32, %arg1: i32, %arg2: memref<1x16x8xbf16, #tpu.memory_space<vmem>>, %arg3: memref<8x128xbf16, #tpu.memory_space<vmem>>, %arg4: memref<1x128xf32, #tpu.memory_space<vmem>>, %arg5: memref<128x128xbf16, #tpu.memory_space<vmem>>, %arg6: memref<1x128xf32, #tpu.memory_space<vmem>>, %arg7: memref<128x32xbf16, #tpu.memory_space<vmem>>, %arg8: memref<1x32xf32, #tpu.memory_space<vmem>>, %arg9: memref<1x32x16xf32, #tpu.memory_space<vmem>>) attributes {dimension_semantics = [#tpu.dimension_semantics<parallel>, #tpu.dimension_semantics<parallel>], iteration_bounds = array<i64: 2, 1>, scalar_prefetch = 0 : i64, scratch_operands = 0 : i64, tpu.core_type = #tpu.core_type<tc>, window_params = [{transform_indices = @transform_0, window_bounds = array<i64: 1, 16, 8>}, {pipeline_mode = #tpu.pipeline_mode<synchronous>, transform_indices = @transform_1, window_bounds = array<i64: 8, 128>}, {pipeline_mode = #tpu.pipeline_mode<synchronous>, transform_indices = @transform_2, window_bounds = array<i64: 1, 128>}, {pipeline_mode = #tpu.pipeline_mode<synchronous>, transform_indices = @transform_3, window_bounds = array<i64: 128, 128>}, {pipeline_mode = #tpu.pipeline_mode<synchronous>, transform_indices = @transform_4, window_bounds = array<i64: 1, 128>}, {pipeline_mode = #tpu.pipeline_mode<synchronous>, transform_indices = @transform_5, window_bounds = array<i64: 128, 32>}, {pipeline_mode = #tpu.pipeline_mode<synchronous>, transform_indices = @transform_6, window_bounds = array<i64: 1, 32>}, {transform_indices = @transform_7, window_bounds = array<i64: 1, 32, 16>}]} {
    %c0 = arith.constant 0 : index
    %c0_0 = arith.constant 0 : index
    %c0_1 = arith.constant 0 : index
    %0 = vector.load %arg2[%c0, %c0_0, %c0_1] : memref<1x16x8xbf16, #tpu.memory_space<vmem>>, vector<1x16x8xbf16>
    %1 = vector.shape_cast %0 : vector<1x16x8xbf16> to vector<16x8xbf16>
    %c0_2 = arith.constant 0 : index
    %c0_3 = arith.constant 0 : index
    %2 = vector.load %arg3[%c0_2, %c0_3] : memref<8x128xbf16, #tpu.memory_space<vmem>>, vector<8x128xbf16>
    %cst = arith.constant dense<0.000000e+00> : vector<16x128xf32>
    %3 = tpu.matmul %1, %2, %cst {dimension_numbers = #tpu.dot_dimension_numbers<[1], [0], [0], [1], [0, 0, 1, 1], [], []>} : vector<16x8xbf16>, vector<8x128xbf16>, vector<16x128xf32> -> vector<16x128xf32>
    %c0_4 = arith.constant 0 : index
    %c0_5 = arith.constant 0 : index
    %4 = vector.load %arg4[%c0_4, %c0_5] : memref<1x128xf32, #tpu.memory_space<vmem>>, vector<1x128xf32>
    %5 = vector.broadcast %4 : vector<1x128xf32> to vector<16x128xf32>
    %6 = arith.addf %3, %5 : vector<16x128xf32>
    %cst_6 = arith.constant 0.797884583 : f32
    %7 = vector.broadcast %cst_6 : f32 to vector<16x128xf32>
    %8 = arith.mulf %7, %6 : vector<16x128xf32>
    %9 = arith.mulf %6, %6 : vector<16x128xf32>
    %cst_7 = arith.constant 4.471500e-02 : f32
    %10 = vector.broadcast %cst_7 : f32 to vector<16x128xf32>
    %11 = arith.mulf %10, %9 : vector<16x128xf32>
    %cst_8 = arith.constant 1.000000e+00 : f32
    %12 = vector.broadcast %cst_8 : f32 to vector<16x128xf32>
    %13 = arith.addf %12, %11 : vector<16x128xf32>
    %14 = arith.mulf %8, %13 : vector<16x128xf32>
    %cst_9 = arith.constant 5.000000e-01 : f32
    %15 = vector.broadcast %cst_9 : f32 to vector<16x128xf32>
    %16 = arith.mulf %15, %6 : vector<16x128xf32>
    %17 = math.tanh %14 : vector<16x128xf32>
    %cst_10 = arith.constant 1.000000e+00 : f32
    %18 = vector.broadcast %cst_10 : f32 to vector<16x128xf32>
    %19 = arith.addf %18, %17 : vector<16x128xf32>
    %20 = arith.mulf %16, %19 : vector<16x128xf32>
    %21 = arith.truncf %20 : vector<16x128xf32> to vector<16x128xbf16>
    %c0_11 = arith.constant 0 : index
    %c0_12 = arith.constant 0 : index
    %22 = vector.load %arg5[%c0_11, %c0_12] : memref<128x128xbf16, #tpu.memory_space<vmem>>, vector<128x128xbf16>
    %cst_13 = arith.constant dense<0.000000e+00> : vector<16x128xf32>
    %23 = tpu.matmul %21, %22, %cst_13 {dimension_numbers = #tpu.dot_dimension_numbers<[1], [0], [0], [1], [0, 0, 1, 1], [], []>} : vector<16x128xbf16>, vector<128x128xbf16>, vector<16x128xf32> -> vector<16x128xf32>
    %c0_14 = arith.constant 0 : index
    %c0_15 = arith.constant 0 : index
    %24 = vector.load %arg6[%c0_14, %c0_15] : memref<1x128xf32, #tpu.memory_space<vmem>>, vector<1x128xf32>
    %25 = vector.broadcast %24 : vector<1x128xf32> to vector<16x128xf32>
    %26 = arith.addf %23, %25 : vector<16x128xf32>
    %cst_16 = arith.constant 0.797884583 : f32
    %27 = vector.broadcast %cst_16 : f32 to vector<16x128xf32>
    %28 = arith.mulf %27, %26 : vector<16x128xf32>
    %29 = arith.mulf %26, %26 : vector<16x128xf32>
    %cst_17 = arith.constant 4.471500e-02 : f32
    %30 = vector.broadcast %cst_17 : f32 to vector<16x128xf32>
    %31 = arith.mulf %30, %29 : vector<16x128xf32>
    %cst_18 = arith.constant 1.000000e+00 : f32
    %32 = vector.broadcast %cst_18 : f32 to vector<16x128xf32>
    %33 = arith.addf %32, %31 : vector<16x128xf32>
    %34 = arith.mulf %28, %33 : vector<16x128xf32>
    %cst_19 = arith.constant 5.000000e-01 : f32
    %35 = vector.broadcast %cst_19 : f32 to vector<16x128xf32>
    %36 = arith.mulf %35, %26 : vector<16x128xf32>
    %37 = math.tanh %34 : vector<16x128xf32>
    %cst_20 = arith.constant 1.000000e+00 : f32
    %38 = vector.broadcast %cst_20 : f32 to vector<16x128xf32>
    %39 = arith.addf %38, %37 : vector<16x128xf32>
    %40 = arith.mulf %36, %39 : vector<16x128xf32>
    %41 = arith.truncf %40 : vector<16x128xf32> to vector<16x128xbf16>
    %c0_21 = arith.constant 0 : index
    %c0_22 = arith.constant 0 : index
    %42 = vector.load %arg7[%c0_21, %c0_22] : memref<128x32xbf16, #tpu.memory_space<vmem>>, vector<128x32xbf16>
    %cst_23 = arith.constant dense<0.000000e+00> : vector<16x32xf32>
    %43 = tpu.matmul %41, %42, %cst_23 {dimension_numbers = #tpu.dot_dimension_numbers<[1], [0], [0], [1], [0, 0, 1, 1], [], []>} : vector<16x128xbf16>, vector<128x32xbf16>, vector<16x32xf32> -> vector<16x32xf32>
    %c0_24 = arith.constant 0 : index
    %c0_25 = arith.constant 0 : index
    %44 = vector.load %arg8[%c0_24, %c0_25] : memref<1x32xf32, #tpu.memory_space<vmem>>, vector<1x32xf32>
    %45 = vector.broadcast %44 : vector<1x32xf32> to vector<16x32xf32>
    %46 = arith.addf %43, %45 : vector<16x32xf32>
    %cst_26 = arith.constant 0.797884583 : f32
    %47 = vector.broadcast %cst_26 : f32 to vector<16x32xf32>
    %48 = arith.mulf %47, %46 : vector<16x32xf32>
    %49 = arith.mulf %46, %46 : vector<16x32xf32>
    %cst_27 = arith.constant 4.471500e-02 : f32
    %50 = vector.broadcast %cst_27 : f32 to vector<16x32xf32>
    %51 = arith.mulf %50, %49 : vector<16x32xf32>
    %cst_28 = arith.constant 1.000000e+00 : f32
    %52 = vector.broadcast %cst_28 : f32 to vector<16x32xf32>
    %53 = arith.addf %52, %51 : vector<16x32xf32>
    %54 = arith.mulf %48, %53 : vector<16x32xf32>
    %cst_29 = arith.constant 5.000000e-01 : f32
    %55 = vector.broadcast %cst_29 : f32 to vector<16x32xf32>
    %56 = arith.mulf %55, %46 : vector<16x32xf32>
    %57 = math.tanh %54 : vector<16x32xf32>
    %cst_30 = arith.constant 1.000000e+00 : f32
    %58 = vector.broadcast %cst_30 : f32 to vector<16x32xf32>
    %59 = arith.addf %58, %57 : vector<16x32xf32>
    %60 = arith.mulf %56, %59 : vector<16x32xf32>
    %61 = tpu.transpose %60, [1, 0] : vector<16x32xf32> -> vector<32x16xf32>
    %c0_31 = arith.constant 0 : index
    %c0_32 = arith.constant 0 : index
    %c0_33 = arith.constant 0 : index
    %62 = vector.load %arg9[%c0_31, %c0_32, %c0_33] : memref<1x32x16xf32, #tpu.memory_space<vmem>>, vector<1x32x16xf32>
    %63 = vector.shape_cast %62 : vector<1x32x16xf32> to vector<32x16xf32>
    %64 = vector.shape_cast %61 : vector<32x16xf32> to vector<1x32x16xf32>
    tpu.vector_store %arg9[%c0_31, %c0_32, %c0_33], %64 {strides = array<i32>} : memref<1x32x16xf32, #tpu.memory_space<vmem>>, vector<1x32x16xf32>,
    return
  }
  func.func @transform_0(%arg0: i32, %arg1: i32) -> (i32, i32, i32) {
    %c0_i32 = arith.constant 0 : i32
    %c0_i32_0 = arith.constant 0 : i32
    return %arg0, %arg1, %c0_i32 : i32, i32, i32
  }
  func.func @transform_1(%arg0: i32, %arg1: i32) -> (i32, i32) {
    %c0_i32 = arith.constant 0 : i32
    %c0_i32_0 = arith.constant 0 : i32
    %c0_i32_1 = arith.constant 0 : i32
    return %c0_i32, %c0_i32_0 : i32, i32
  }
  func.func @transform_2(%arg0: i32, %arg1: i32) -> (i32, i32) {
    %c0_i32 = arith.constant 0 : i32
    %c0_i32_0 = arith.constant 0 : i32
    %c0_i32_1 = arith.constant 0 : i32
    return %c0_i32, %c0_i32_0 : i32, i32
  }
  func.func @transform_3(%arg0: i32, %arg1: i32) -> (i32, i32) {
    %c0_i32 = arith.constant 0 : i32
    %c0_i32_0 = arith.constant 0 : i32
    %c0_i32_1 = arith.constant 0 : i32
    return %c0_i32, %c0_i32_0 : i32, i32
  }
  func.func @transform_4(%arg0: i32, %arg1: i32) -> (i32, i32) {
    %c0_i32 = arith.constant 0 : i32
    %c0_i32_0 = arith.constant 0 : i32
    %c0_i32_1 = arith.constant 0 : i32
    return %c0_i32, %c0_i32_0 : i32, i32
  }
  func.func @transform_5(%arg0: i32, %arg1: i32) -> (i32, i32) {
    %c0_i32 = arith.constant 0 : i32
    %c0_i32_0 = arith.constant 0 : i32
    %c0_i32_1 = arith.constant 0 : i32
    return %c0_i32, %c0_i32_0 : i32, i32
  }
  func.func @transform_6(%arg0: i32, %arg1: i32) -> (i32, i32) {
    %c0_i32 = arith.constant 0 : i32
    %c0_i32_0 = arith.constant 0 : i32
    %c0_i32_1 = arith.constant 0 : i32
    return %c0_i32, %c0_i32_0 : i32, i32
  }
  func.func @transform_7(%arg0: i32, %arg1: i32) -> (i32, i32, i32) {
    %c0_i32 = arith.constant 0 : i32
    %c0_i32_0 = arith.constant 0 : i32
    return %arg0, %c0_i32, %arg1 : i32, i32, i32
  }
}

</mosaic_0001>

<bundles_post_ra>
// kernel: edgeconv2_forward.1
= control target key start
LH: loop header
LB: loop body
LE: loop exit
PB: predicated region body
PF: predicated region fallthrough
CT: control target
= control target key end

     0   :  { %s1001_s24 = smov 0   ;;  %s1003_s25 = smov 0   ;;  %s1118_s0 = inlined_call_operand.vmem [shape: bf16[2,16,8], index: 0, kind: input, shape index: {}]   ;;  %s1119_s1 = inlined_call_operand.vmem [shape: bf16[8,128], index: 1, kind: input, shape index: {}]   ;;  %s1120_s2 = inlined_call_operand.vmem [shape: f32[1,128], index: 2, kind: input, shape index: {}]   ;;  %s1121_s3 = inlined_call_operand.vmem [shape: bf16[128,128], index: 3, kind: input, shape index: {}]   ;;  %s1122_s4 = inlined_call_operand.vmem [shape: f32[1,128], index: 4, kind: input, shape index: {}]   ;;  %s1123_s5 = inlined_call_operand.vmem [shape: bf16[128,32], index: 5, kind: input, shape index: {}]   ;;  %s1124_s6 = inlined_call_operand.vmem [shape: f32[1,32], index: 6, kind: input, shape index: {}]   ;;  %s1125_s7 = inlined_call_operand.vmem [shape: f32[2,32,16], index: 7, kind: output, shape index: {}]  }
   0x1   :  { %s1005_s26 = smov 0  }
   0x2 LB: > { %s29_s27 = sadd.s32 1, %s953_s25  ;;  %p784_p0 = scmp.ge.s32.totalorder %s957_s26, 1  ;;  %s957_s26 = sphi %s1005_s26, %s17_s26   ;;  %s953_s25 = sphi %s1003_s25, %s1127_s25   ;;  %s949_s24 = sphi %s1001_s24, %s1126_s24  }
   0x3   : > { %p31_p1 = scmp.ge.s32.totalorder %s29_s27, 2  ;;  %p258_p2 = scmp.lt.s32.totalorder %s957_s26, 3 }
   0x5   : > { %s1129_s27 = smov (%p31_p1, %s29_s27), 0  ;;  %p259_p3 = pnand %p784_p0, %p258_p2 }
   0x6   : > { %p298_p4 = scmp.lt.s32.totalorder (!%p259_p3), %s949_s24, 1 }
   0x7   : > { %262 = sbr.rel (%p259_p3) target bundleno = 830 (0x33e), region = 48 }
   0xc   : > { %v318_v0 = vld [vmem:[%s1119_s1] sm:$0xf]  ;;  %vm335_vm0 = vcmask 1043456   ;;  %v959_v1 = vmov 0.0   ;;  %vm960_vm1 = vmmov 0   ;;  %s1131_s24 = smov (!%p298_p4, %s949_s24), 1 }
   0xd   : > { %834 = vmatprep.subr.bf16.mxu0 %v959_v1  ;;  %v337_v2 = vsel %vm335_vm0, %v318_v0, 0  ;;  %836 = vmatprep.mubr.msk.bf16.mxu0 %vm960_vm1, %v959_v1  ;;  %s812_s30 = sshll.u32 %s1131_s24, 3  ;;  %vm331_vm2 = vcmask 64512   ;;  %v907_v4 = vld [vmem:[%s1121_s3 + $0x38] sm:$0xff]   ;;  %v908_v5 = vld [vmem:[%s1121_s3 + $0x30] sm:$0xff]   ;;  %v909_v6 = vld [vmem:[%s1121_s3 + $0x28] sm:$0xff]  }
   0xe   : > { %835 = vmatpush3.bf16.msra.mxu0 %v337_v2  ;;  %840 = vmatprep.subr.bf16.mxu1 %v959_v1  ;;  %s305_s10 = scalar_lea.vmem %s1118_s0, %s812_s30  ;;  %v910_v7 = vld [vmem:[%s1121_s3 + $0x20] sm:$0xff]   ;;  %v911_v8 = vld [vmem:[%s1121_s3 + $0x18] sm:$0xff]   ;;  %v912_v9 = vld [vmem:[%s1121_s3 + $0x10] sm:$0xff]   ;;  %s813_s11 = sshll.u32 %s1131_s24, 5  ;;  %vm692_vm3 = vcmask 130048  }
   0xf   : > { %856 = vmatprep.mubr.msk.bf16.mxu1 %vm960_vm1, %v959_v1  ;;  %860 = vmatprep.subr.bf16.mxu0 %v959_v1  ;;  %v906_v3 = vld [vmem:[%s305_s10] sm:$0xff]   ;;  %v913_v10 = vld [vmem:[%s1121_s3 + $0x8] sm:$0xff]   ;;  %v915_v38 = vld [vmem:[%s1123_s5 + $0x38] sm:$0xff]   ;;  %s314_s14 = scalar_lea.vmem %s1125_s7, %s813_s11 }
  0x10   : > { %841 = vmatpush3.bf16.msra.mxu1 %v907_v4  ;;  %v914_v11 = vld [vmem:[%s1121_s3] sm:$0xff]   ;;  %v916_v39 = vld [vmem:[%s1123_s5 + $0x30] sm:$0xff]   ;;  %v917_v40 = vld [vmem:[%s1123_s5 + $0x28] sm:$0xff]  }
  0x11   : > { %837 = vmatmul.mubr.msk.bf16.vlgmr.msra.gmra.mxu0 %vm331_vm2, %v906_v3  ;;  %842 = vmatprep.subr.bf16.mxu1 %v959_v1  ;;  %v789_v12 = vld [vmem:[%s1120_s2] ss:$0 sm:$0xff]  ;;  %v919_v42 = vld [vmem:[%s1123_s5 + $0x18] sm:$0xff]   ;;  %v920_v43 = vld [vmem:[%s1123_s5 + $0x10] sm:$0xff]  }
  0x12   : > { %876 = vmatprep.mubr.msk.bf16.mxu0 %vm960_vm1, %v959_v1  ;;  %861 = vmatpush3.bf16.msra.mxu0 %v915_v38  ;;  %v918_v41 = vld [vmem:[%s1123_s5 + $0x20] sm:$0xff]   ;;  %v921_v44 = vld [vmem:[%s1123_s5 + $0x8] sm:$0xff]  }
  0x13   : > { %862 = vmatprep.subr.bf16.mxu0 %v959_v1  ;;  %v922_v45 = vld [vmem:[%s1123_s5] sm:$0xff]  }
  0x14   : > { %843 = vmatpush3.bf16.msra.mxu1 %v908_v5  ;;  %v792_v46 = vld [vmem:[%s1122_s4] ss:$0 sm:$0xff] }
  0x15   : > { %844 = vmatprep.subr.bf16.mxu1 %v959_v1 }
  0x16   : > { %863 = vmatpush3.bf16.msra.mxu0 %v916_v39 }
  0x17   : > { %864 = vmatprep.subr.bf16.mxu0 %v959_v1 }
  0x18   : > { %845 = vmatpush3.bf16.msra.mxu1 %v909_v6 }
  0x19   : > { %846 = vmatprep.subr.bf16.mxu1 %v959_v1 }
  0x1a   : > { %865 = vmatpush3.bf16.msra.mxu0 %v917_v40 }
  0x1b   : > { %866 = vmatprep.subr.bf16.mxu0 %v959_v1 }
  0x1c   : > { %847 = vmatpush3.bf16.msra.mxu1 %v910_v7 }
  0x1d   : > { %848 = vmatprep.subr.bf16.mxu1 %v959_v1 }
  0x1e   : > { %867 = vmatpush3.bf16.msra.mxu0 %v918_v41 }
  0x1f   : > { %868 = vmatprep.subr.bf16.mxu0 %v959_v1 }
  0x20   : > { %849 = vmatpush3.bf16.msra.mxu1 %v911_v8  ;;  %v801_v8 = vld [vmem:[%s1124_s6] ss:$0 sm:$0xff] }
  0x21   : > { %850 = vmatprep.subr.bf16.mxu1 %v959_v1 }
  0x22   : > { %869 = vmatpush3.bf16.msra.mxu0 %v919_v42 }
  0x23   : > { %870 = vmatprep.subr.bf16.mxu0 %v959_v1 }
  0x24   : > { %851 = vmatpush3.bf16.msra.mxu1 %v912_v9 }
  0x25   : > { %852 = vmatprep.subr.bf16.mxu1 %v959_v1 }
  0x26   : > { %871 = vmatpush3.bf16.msra.mxu0 %v920_v43 }
  0x27   : > { %872 = vmatprep.subr.bf16.mxu0 %v959_v1 }
  0x28   : > { %853 = vmatpush3.bf16.msra.mxu1 %v913_v10 }
  0x29   : > { %854 = vmatprep.subr.bf16.mxu1 %v959_v1 }
  0x2a   : > { %873 = vmatpush3.bf16.msra.mxu0 %v921_v44 }
  0x2b   : > { %874 = vmatprep.subr.bf16.mxu0 %v959_v1 }
  0x2c   : > { %855 = vmatpush3.bf16.msra.mxu1 %v914_v11 }
  0x2e   : > { %875 = vmatpush3.bf16.msra.mxu0 %v922_v45 }
  0xd1   : > { %v373_v13 = vpop.f32.mrf.mxu0 }
  0xd2   : > { %v374_v14 = vadd.f32 %v789_v12, %v373_v13 }
  0xd3   : > { %v838_v15 = vpop.f32.mrf.mxu0 }
  0xd4   : > { %v382_v16 = vmul.f32 %v374_v14, %v374_v14  ;;  %v380_v21 = vmul.f32 0.7978846, %v374_v14  ;;  %v390_v32 = vmul.f32 0.5, %v374_v14 }
  0xd5   : > { %v376_v17 = vpop.f32.mrf.mxu0 }
  0xd6   : > { %v384_v18 = vmul.f32 0.044715, %v382_v16  ;;  %v377_v19 = vadd.f32 %v789_v12, %v376_v17 }
  0xd7   : > { %v839_v20 = vpop.f32.mrf.mxu0 }
  0xd8   : > { %v386_v22 = vadd.f32 1.0, %v384_v18  ;;  %v383_v23 = vmul.f32 %v377_v19, %v377_v19  ;;  %v381_v26 = vmul.f32 0.7978846, %v377_v19  ;;  %v391_v33 = vmul.f32 0.5, %v377_v19 }
  0xda   : > { %v388_v24 = vmul.f32 %v386_v22, %v380_v21  ;;  %v385_v25 = vmul.f32 0.044715, %v383_v23 }
  0xdc   : > { %923 = vtanh.f32 %v388_v24  ;;  %v387_v27 = vadd.f32 1.0, %v385_v25 }
  0xde   : > { %v389_v28 = vmul.f32 %v387_v27, %v381_v26 }
  0xe0   : > { %925 = vtanh.f32 %v389_v28 }
  0xe9   : > { %v924_v29 = vpop.eup %923 }
  0xea   : > { %v394_v30 = vadd.f32 1.0, %v924_v29 }
  0xec   : > { %v396_v35 = vmul.f32 %v394_v30, %v390_v32 }
  0xed   : > { %v926_v31 = vpop.eup %925 }
  0xee   : > { %v395_v34 = vadd.f32 1.0, %v926_v31 }
  0xf0   : > { %v397_v36 = vmul.f32 %v395_v34, %v391_v33 }
  0xf2   : > { %v398_v37 = vpack.c.bf16 %v397_v36, %v396_v35 }
  0xf4   : > { %857 = vmatmul.mubr.bf16.vlgmr.msra.gmra.mxu1 %v398_v37 }
 0x1b4   : > { %v504_v47 = vpop.f32.mrf.mxu1 }
 0x1b5   : > { %v505_v48 = vadd.f32 %v792_v46, %v504_v47 }
 0x1b6   : > { %v858_v49 = vpop.f32.mrf.mxu1 }
 0x1b7   : > { %v513_v50 = vmul.f32 %v505_v48, %v505_v48  ;;  %v511_v55 = vmul.f32 0.7978846, %v505_v48  ;;  %v521_v2 = vmul.f32 0.5, %v505_v48 }
 0x1b8   : > { %v507_v51 = vpop.f32.mrf.mxu1 }
 0x1b9   : > { %v515_v52 = vmul.f32 0.044715, %v513_v50  ;;  %v508_v53 = vadd.f32 %v792_v46, %v507_v51 }
 0x1ba   : > { %v859_v54 = vpop.f32.mrf.mxu1 }
 0x1bb   : > { %v517_v56 = vadd.f32 1.0, %v515_v52  ;;  %v514_v57 = vmul.f32 %v508_v53, %v508_v53  ;;  %v512_v60 = vmul.f32 0.7978846, %v508_v53  ;;  %v522_v3 = vmul.f32 0.5, %v508_v53 }
 0x1bd   : > { %v519_v58 = vmul.f32 %v517_v56, %v511_v55  ;;  %v516_v59 = vmul.f32 0.044715, %v514_v57 }
 0x1bf   : > { %927 = vtanh.f32 %v519_v58  ;;  %v518_v61 = vadd.f32 1.0, %v516_v59 }
 0x1c1   : > { %v520_v62 = vmul.f32 %v518_v61, %v512_v60 }
 0x1c3   : > { %929 = vtanh.f32 %v520_v62 }
 0x1cc   : > { %v928_v63 = vpop.eup %927 }
 0x1cd   : > { %v525_v0 = vadd.f32 1.0, %v928_v63 }
 0x1cf   : > { %v527_v5 = vmul.f32 %v525_v0, %v521_v2 }
 0x1d0   : > { %v930_v1 = vpop.eup %929 }
 0x1d1   : > { %v526_v4 = vadd.f32 1.0, %v930_v1 }
 0x1d3   : > { %v528_v6 = vmul.f32 %v526_v4, %v522_v3 }
 0x1d5   : > { %v529_v7 = vpack.c.bf16 %v528_v6, %v527_v5 }
 0x1d7   : > { %877 = vmatmul.mubr.bf16.vlgmr.msra.gmra.mxu0 %v529_v7 }
 0x297   : > { %v635_v9 = vpop.f32.mrf.mxu0 }
 0x298   : > { %v636_v10 = vadd.f32 %v801_v8, %v635_v9 }
 0x299   : > { %v878_v11 = vpop.f32.mrf.mxu0 }
 0x29a   : > { %v644_v12 = vmul.f32 %v636_v10, %v636_v10  ;;  %v642_v17 = vmul.f32 0.7978846, %v636_v10  ;;  %v652_v26 = vmul.f32 0.5, %v636_v10 }
 0x29b   : > { %v638_v13 = vpop.f32.mrf.mxu0 }
 0x29c   : > { %v646_v14 = vmul.f32 0.044715, %v644_v12  ;;  %v639_v15 = vadd.f32 %v801_v8, %v638_v13 }
 0x29d   : > { %v879_v16 = vpop.f32.mrf.mxu0 }
 0x29e   : > { %v648_v18 = vadd.f32 1.0, %v646_v14  ;;  %v645_v19 = vmul.f32 %v639_v15, %v639_v15  ;;  %v643_v22 = vmul.f32 0.7978846, %v639_v15  ;;  %v653_v30 = vmul.f32 0.5, %v639_v15 }
 0x2a0   : > { %v647_v20 = vmul.f32 0.044715, %v645_v19  ;;  %v650_v21 = vmul.f32 %v648_v18, %v642_v17 }
 0x2a2   : > { %v649_v23 = vadd.f32 1.0, %v647_v20  ;;  %931 = vtanh.f32 %v650_v21 }
 0x2a4   : > { %v651_v24 = vmul.f32 %v649_v23, %v643_v22 }
 0x2a6   : > { %933 = vtanh.f32 %v651_v24 }
 0x2af   : > { %v932_v25 = vpop.eup %931 }
 0x2b0   : > { %v656_v27 = vadd.f32 1.0, %v932_v25 }
 0x2b2   : > { %v658_v28 = vmul.f32 %v656_v27, %v652_v26 }
 0x2b3   : > { %v934_v29 = vpop.eup %933 }
 0x2b4   : > { %660 = vxpose.xlu0.b32.start [1/2] (short) (narrow) %v658_v28, 32  ;;  %v657_v31 = vadd.f32 1.0, %v934_v29 }
 0x2b6   : > { %v659_v32 = vmul.f32 %v657_v31, %v653_v30 }
 0x2b8   : > { %661 = vxpose.xlu0.b32.end [2/2] (short) (narrow) %v659_v32, 32 }
 0x330   : > { %v676_v33 = vpop.trf.xlu0 }
 0x331   : > { %693 = vst.msk [vmem:[%s314_s14] sm:$0xff] %vm692_vm3, %v676_v33 }
 0x334   : > { %v677_v34 = vpop.trf.xlu0 }
 0x335   : > { %694 = vst.msk [vmem:[%s314_s14 + $0x8] sm:$0xff] %vm692_vm3, %v677_v34 }
 0x338   : > { %v678_v35 = vpop.trf.xlu0 }
 0x339   : > { %695 = vst.msk [vmem:[%s314_s14 + $0x10] sm:$0xff] %vm692_vm3, %v678_v35 }
 0x33c   : > { %v679_v36 = vpop.trf.xlu0 }
 0x33d   : > { %696 = vst.msk [vmem:[%s314_s14 + $0x18] sm:$0xff] %vm692_vm3, %v679_v36 }
 0x33e PF: > { %s17_s26 = sadd.s32 1, %s957_s26   ;;  %s1126_s24 = smov %s953_s25 }
 0x33f   : > { %p14_p5 = scmp.ge.s32.totalorder %s17_s26, 4   ;;  %s1127_s25 = smov %s1129_s27 }
 0x341   :  { %16 = sbr.rel (!%p14_p5) target bundleno = 2 (0x2), region = 78 }

</bundles_post_ra>
